<compile_context>
chip_gen: v7x
topology: tpu7x:2x2x1
jax: 0.10.0
libtpu: 0.0.40
codegen_flags: <defaults>
</compile_context>

<pallas_src>
import functools

import jax
import jax.numpy as jnp
from jax.experimental import pallas as pl
from jax.experimental.pallas import tpu as pltpu

INPUT_SIZE = 784
HIDDEN_SIZE = 100
NUM_CLASSES = 10

_LANE = 128
_SUBLANE = 8


def _round_up(n, m):
    return ((n + m - 1) // m) * m


def mlp_kernel(x_ref, w1_ref, b1_ref, w2_ref, b2_ref, o_ref):
    # x_ref: (bm, 784) f32 | w1_ref: (784, 128) bf16 | b1_ref: (1, 128) f32
    # w2_ref: (128, 10) bf16 | b2_ref: (1, 10) f32   | o_ref: (bm, 10) f32
    x = x_ref[...].astype(jnp.bfloat16)                                # cast in VMEM
    h = jnp.dot(x, w1_ref[...], preferred_element_type=jnp.float32)    # (bm, 128) f32
    h = jnp.maximum(h + b1_ref[...], 0.0)                              # bias + ReLU in f32
    out = jnp.dot(h.astype(jnp.bfloat16), w2_ref[...],
                  preferred_element_type=jnp.float32)                  # (bm, 10) f32
    o_ref[...] = (out + b2_ref[...]).astype(o_ref.dtype)


def prepare_params(w1_t, b1, w2_t, b2):
    """One-time pad+cast of the parameters (run once, outside the forward).

    w1_t: (784, H), b1: (1, H), w2_t: (H, C), b2: (1, C).  Hidden dim is padded
    100 -> 128 with zeros (zero columns of W1 / zero bias -> zero hidden lanes,
    zero rows of W2 -> no effect on logits).  Weights bf16, biases f32.
    """
    D, H = w1_t.shape
    C = w2_t.shape[1]
    Hp = _round_up(H, _LANE)
    w1_p = jnp.zeros((D, Hp), jnp.bfloat16).at[:, :H].set(w1_t.astype(jnp.bfloat16))
    b1_p = jnp.zeros((1, Hp), jnp.float32).at[:, :H].set(b1.reshape(1, H).astype(jnp.float32))
    w2_p = jnp.zeros((Hp, C), jnp.bfloat16).at[:H, :].set(w2_t.astype(jnp.bfloat16))
    b2_p = b2.reshape(1, C).astype(jnp.float32)
    return w1_p, b1_p, w2_p, b2_p


def _pick_bm(B, bm_max=1024):
    """Batch-aware tile: >= 4 grid steps when possible, multiple of 8, capped for VMEM."""
    if B <= 4 * _SUBLANE:
        return _round_up(max(B, 1), _SUBLANE)
    return min(bm_max, _round_up(pl.cdiv(B, 4), _SUBLANE))


@functools.partial(jax.jit, static_argnames=("bm",))
def neural_net_forward(x, w1_p, b1_p, w2_p, b2_p, *, bm):
    """x: (B, 784) f32, pre-padded params from prepare_params.  Returns (B, 10) f32."""
    B, D = x.shape
    Hp = w1_p.shape[1]
    C = w2_p.shape[1]

    return pl.pallas_call(
        mlp_kernel,
        out_shape=jax.ShapeDtypeStruct((B, C), jnp.float32),
        grid_spec=pltpu.PrefetchScalarGridSpec(
            num_scalar_prefetch=0,
            grid=(pl.cdiv(B, bm),),                        # ragged tail handled by masking
            in_specs=[
                pl.BlockSpec((bm, D), lambda i: (i, 0)),   # x tile over batch (f32, streamed)
                pl.BlockSpec((D, Hp), lambda i: (0, 0)),   # W1 (full, VMEM-resident)
                pl.BlockSpec((1, Hp), lambda i: (0, 0)),   # b1
                pl.BlockSpec((Hp, C), lambda i: (0, 0)),   # W2
                pl.BlockSpec((1, C), lambda i: (0, 0)),    # b2
            ],
            out_specs=pl.BlockSpec((bm, C), lambda i: (i, 0)),  # direct (B, 10) output
        ),
        compiler_params=pltpu.CompilerParams(
            dimension_semantics=("parallel",),
        ),
    )(x, w1_p, b1_p, w2_p, b2_p)


def init_params(key):
    """Deterministic init matching nn.Linear shapes (U(-1/sqrt(fan_in), 1/sqrt(fan_in)))."""
    k1, k2, k3, k4 = jax.random.split(key, 4)
    bound1 = 1.0 / jnp.sqrt(float(INPUT_SIZE))
    bound2 = 1.0 / jnp.sqrt(float(HIDDEN_SIZE))
    # PyTorch Linear stores weight as (out, in); we keep the transposed layout (in, out).
    w1_t = jax.random.uniform(k1, (INPUT_SIZE, HIDDEN_SIZE), jnp.float32, -bound1, bound1)
    b1 = jax.random.uniform(k2, (1, HIDDEN_SIZE), jnp.float32, -bound1, bound1)
    w2_t = jax.random.uniform(k3, (HIDDEN_SIZE, NUM_CLASSES), jnp.float32, -bound2, bound2)
    b2 = jax.random.uniform(k4, (1, NUM_CLASSES), jnp.float32, -bound2, bound2)
    return w1_t, b1, w2_t, b2


if __name__ == "__main__":
    key = jax.random.PRNGKey(0)
    kx, kp = jax.random.split(key)

    # Small batch, deliberately NOT a multiple of the tile -> exercises masked tail block.
    batch = 37
    x = jax.random.normal(kx, (batch, INPUT_SIZE), jnp.float32)
    w1_t, b1, w2_t, b2 = init_params(kp)

    params = prepare_params(w1_t, b1, w2_t, b2)      # one-time pad + cast
    bm = _pick_bm(batch)                             # 16 -> grid of 3 steps here

    out = neural_net_forward(x, *params, bm=bm)
    out = jax.block_until_ready(out)
    assert out.shape == (batch, NUM_CLASSES)

    # Reference mirroring the kernel's numerics (bf16 operands, f32 accumulation).
    xb = x.astype(jnp.bfloat16)
    h_ref = jnp.maximum(
        jnp.dot(xb, w1_t.astype(jnp.bfloat16), preferred_element_type=jnp.float32) + b1, 0.0)
    ref_bf16 = jnp.dot(h_ref.astype(jnp.bfloat16), w2_t.astype(jnp.bfloat16),
                       preferred_element_type=jnp.float32) + b2
    assert jnp.allclose(out, ref_bf16, atol=1e-2, rtol=1e-2)

    # Loose sanity check against the pure-f32 PyTorch-equivalent math.
    # TODO(synk): bf16 weights/activations are an intentional precision drop vs f32 parity.
    ref_f32 = jnp.maximum(x @ w1_t + b1, 0.0) @ w2_t + b2
    assert jnp.allclose(out, ref_f32, atol=5e-2, rtol=5e-2)

    print("KERNEL_OK")
</pallas_src>

<mosaic_0001>
module attributes {stable_mosaic.version = 11 : i64} {
  func.func @mlp_kernel(%arg0: i32, %arg1: memref<16x784xf32, #tpu.memory_space<vmem>>, %arg2: memref<784x128xbf16, #tpu.memory_space<vmem>>, %arg3: memref<1x128xf32, #tpu.memory_space<vmem>>, %arg4: memref<128x10xbf16, #tpu.memory_space<vmem>>, %arg5: memref<1x10xf32, #tpu.memory_space<vmem>>, %arg6: memref<16x10xf32, #tpu.memory_space<vmem>>) attributes {dimension_semantics = [#tpu.dimension_semantics<parallel>], iteration_bounds = array<i64: 3>, scalar_prefetch = 0 : i64, scratch_operands = 0 : i64, tpu.core_type = #tpu.core_type<tc>, window_params = [{transform_indices = @transform_0, window_bounds = array<i64: 16, 784>}, {pipeline_mode = #tpu.pipeline_mode<synchronous>, transform_indices = @transform_1, window_bounds = array<i64: 784, 128>}, {pipeline_mode = #tpu.pipeline_mode<synchronous>, transform_indices = @transform_2, window_bounds = array<i64: 1, 128>}, {pipeline_mode = #tpu.pipeline_mode<synchronous>, transform_indices = @transform_3, window_bounds = array<i64: 128, 10>}, {pipeline_mode = #tpu.pipeline_mode<synchronous>, transform_indices = @transform_4, window_bounds = array<i64: 1, 10>}, {transform_indices = @transform_5, window_bounds = array<i64: 16, 10>}]} {
    %c0 = arith.constant 0 : index
    %c0_0 = arith.constant 0 : index
    %0 = vector.load %arg1[%c0, %c0_0] : memref<16x784xf32, #tpu.memory_space<vmem>>, vector<16x784xf32>
    %1 = arith.truncf %0 : vector<16x784xf32> to vector<16x784xbf16>
    %c0_1 = arith.constant 0 : index
    %c0_2 = arith.constant 0 : index
    %2 = vector.load %arg2[%c0_1, %c0_2] : memref<784x128xbf16, #tpu.memory_space<vmem>>, vector<784x128xbf16>
    %cst = arith.constant dense<0.000000e+00> : vector<16x128xf32>
    %3 = tpu.matmul %1, %2, %cst {dimension_numbers = #tpu.dot_dimension_numbers<[1], [0], [0], [1], [0, 0, 1, 1], [], []>} : vector<16x784xbf16>, vector<784x128xbf16>, vector<16x128xf32> -> vector<16x128xf32>
    %c0_3 = arith.constant 0 : index
    %c0_4 = arith.constant 0 : index
    %4 = vector.load %arg3[%c0_3, %c0_4] : memref<1x128xf32, #tpu.memory_space<vmem>>, vector<1x128xf32>
    %5 = vector.broadcast %4 : vector<1x128xf32> to vector<16x128xf32>
    %6 = arith.addf %3, %5 : vector<16x128xf32>
    %cst_5 = arith.constant 0.000000e+00 : f32
    %7 = vector.broadcast %cst_5 : f32 to vector<16x128xf32>
    %8 = arith.maximumf %6, %7 : vector<16x128xf32>
    %9 = arith.truncf %8 : vector<16x128xf32> to vector<16x128xbf16>
    %c0_6 = arith.constant 0 : index
    %c0_7 = arith.constant 0 : index
    %10 = vector.load %arg4[%c0_6, %c0_7] : memref<128x10xbf16, #tpu.memory_space<vmem>>, vector<128x10xbf16>
    %cst_8 = arith.constant dense<0.000000e+00> : vector<16x10xf32>
    %11 = tpu.matmul %9, %10, %cst_8 {dimension_numbers = #tpu.dot_dimension_numbers<[1], [0], [0], [1], [0, 0, 1, 1], [], []>} : vector<16x128xbf16>, vector<128x10xbf16>, vector<16x10xf32> -> vector<16x10xf32>
    %c0_9 = arith.constant 0 : index
    %c0_10 = arith.constant 0 : index
    %12 = vector.load %arg5[%c0_9, %c0_10] : memref<1x10xf32, #tpu.memory_space<vmem>>, vector<1x10xf32>
    %13 = vector.broadcast %12 : vector<1x10xf32> to vector<16x10xf32>
    %14 = arith.addf %11, %13 : vector<16x10xf32>
    %c0_11 = arith.constant 0 : index
    %c0_12 = arith.constant 0 : index
    %15 = vector.load %arg6[%c0_11, %c0_12] : memref<16x10xf32, #tpu.memory_space<vmem>>, vector<16x10xf32>
    tpu.vector_store %arg6[%c0_11, %c0_12], %14 {strides = array<i32>} : memref<16x10xf32, #tpu.memory_space<vmem>>, vector<16x10xf32>,
    return
  }
  func.func @transform_0(%arg0: i32) -> (i32, i32) {
    %c0_i32 = arith.constant 0 : i32
    %c0_i32_0 = arith.constant 0 : i32
    return %arg0, %c0_i32 : i32, i32
  }
  func.func @transform_1(%arg0: i32) -> (i32, i32) {
    %c0_i32 = arith.constant 0 : i32
    %c0_i32_0 = arith.constant 0 : i32
    %c0_i32_1 = arith.constant 0 : i32
    return %c0_i32, %c0_i32_0 : i32, i32
  }
  func.func @transform_2(%arg0: i32) -> (i32, i32) {
    %c0_i32 = arith.constant 0 : i32
    %c0_i32_0 = arith.constant 0 : i32
    %c0_i32_1 = arith.constant 0 : i32
    return %c0_i32, %c0_i32_0 : i32, i32
  }
  func.func @transform_3(%arg0: i32) -> (i32, i32) {
    %c0_i32 = arith.constant 0 : i32
    %c0_i32_0 = arith.constant 0 : i32
    %c0_i32_1 = arith.constant 0 : i32
    return %c0_i32, %c0_i32_0 : i32, i32
  }
  func.func @transform_4(%arg0: i32) -> (i32, i32) {
    %c0_i32 = arith.constant 0 : i32
    %c0_i32_0 = arith.constant 0 : i32
    %c0_i32_1 = arith.constant 0 : i32
    return %c0_i32, %c0_i32_0 : i32, i32
  }
  func.func @transform_5(%arg0: i32) -> (i32, i32) {
    %c0_i32 = arith.constant 0 : i32
    %c0_i32_0 = arith.constant 0 : i32
    return %arg0, %c0_i32 : i32, i32
  }
}

</mosaic_0001>

<bundles_post_ra>
// kernel: neural_net_forward.1
= control target key start
LH: loop header
LB: loop body
LE: loop exit
PB: predicated region body
PF: predicated region fallthrough
CT: control target
= control target key end

     0   :  { %10 = vsyncpa [#allocation3], 0  ;;  %s2037_s0 = inlined_call_operand.hbm [shape: f32[37,784], index: 0, kind: input, shape index: {}]   ;;  %s2038_s1 = inlined_call_operand.hbm [shape: bf16[784,128], index: 1, kind: input, shape index: {}]   ;;  %s2039_s2 = inlined_call_operand.vmem [shape: f32[1,128], index: 2, kind: input, shape index: {}]   ;;  %s2040_s3 = inlined_call_operand.vmem [shape: bf16[128,10], index: 3, kind: input, shape index: {}]   ;;  %s2041_s4 = inlined_call_operand.vmem [shape: f32[1,10], index: 4, kind: input, shape index: {}]   ;;  %s2042_s5 = inlined_call_operand.vmem [shape: f32[37,10], index: 5, kind: output, shape index: {}]  }
   0x1   :  { %12 = vsyncpa [#allocation3 + $0x1], 0 }
   0x2   :  { %13 = vsyncpa [#allocation5], 0  ;;  %s1789_s18 = smov 0   ;;  %s1791_s19 = smov 0  }
   0x3   :  { %s1793_s20 = smov 0   ;;  %s1795_s21 = smov 0  }
   0x4 LB: > { %s1808_s22 = sadd.s32 4294967295, %s1717_s21   ;;  %s1811_s23 = sadd.s32 1, %s1717_s21   ;;  %s1717_s21 = sphi %s1795_s21, %s2060_s21   ;;  %s1713_s20 = sphi %s1793_s20, %s2059_s20   ;;  %s1709_s19 = sphi %s1791_s19, %s2058_s19   ;;  %s1705_s18 = sphi %s1789_s18, %s2057_s18  }
   0x5   : > { %s23_s24 = ssub.s32 %s1717_s21, %s1811_s23  ;;  %s26_s25 = sadd.s32 1, %s1713_s20 }
   0x6   : > { %p24_p0 = scmp.eq.s32.totalorder %s23_s24, 0  ;;  %p33_p1 = scmp.ne.s32.totalorder %s1713_s20, %s1709_s19 }
   0x7   : > { %p34_p2 = scmp.eq.s32.totalorder %s1717_s21, 0  ;;  %p39_p3 = scmp.ne.s32.totalorder %s1709_s19, %s1705_s18 }
   0x8   : > { %s1821_s26 = scalar_select %p24_p0, %s1713_s20, %s26_s25  }
   0x9   : > { %p1823_p4 = por %p34_p2, %p33_p1  ;;  %p2043_p5 = scmp.eq.s32.totalorder %s1808_s22, 0 }
   0xa   : > { %p147_p6 = scmp.eq.s32.totalorder %s1808_s22, 2  ;;  %p1221_p7 = scmp.ge.s32.totalorder %s1717_s21, 1 }
   0xb   : > { %s2046_s27 = scalar_select %p1823_p4, 1, 0 }
   0xc   : > { %p1832_p8 = por %p2043_p5, %p39_p3  ;;  %p160_p9 = scmp.lt.s32.totalorder %s1717_s21, 4 }
   0xd   : > { %p1837_p10 = por %p147_p6, %p33_p1  ;;  %s1751_s6 = smov [#allocation4]  }
   0xe   : > { %s2047_s28 = scalar_select %p1832_p8, 1, 0 }
   0xf   : > { %s2048_s29 = scalar_select %p1837_p10, 1, 0 }
  0x10   : > { %p1841_p11 = pnand %p1221_p7, %p160_p9  ;;  %s172_s7 = sshll.u32 %s1751_s6, 4  ;;  %s173_s7 = int_to_ptr.vmem [resolvable:$true] %s172_s7 }
  0x11   : > { %s1591_s11 = scalar_lea.hbm %s2038_s1, 6272 }
  0x12   : > { %s2049_s30 = scalar_select %p1841_p11, 1, 0 }
  0x13   : > { %p1425_p12 = pneg %p1841_p11  ;;  %p1592_p0 = scmp.ne.s32.totalorder %s2038_s1, %s1591_s11 }
  0x14   : > { %p1598_p6 = scmp.lt.u32.totalorder %s1591_s11, %s2038_s1 }
  0x15   : > { %p1849_p13 = pnand %p1425_p12, %p2043_p5 }
  0x17   : > { %p1593_p1 = pneg %p1849_p13 }
  0x19   : > { %p1594_p2 = pnand %p1593_p1, %p1592_p0 }
  0x1b   : > { %p1595_p3 = pneg %p1594_p2 }
  0x1d   : > { %p1600_p7 = pnand %p1598_p6, %p1595_p3 }
  0x1f   : > { %1603 = shalt.err (!%p1600_p7)
}
  0x20   : > { %s1604_s16 = scalar_lea.vmem %s173_s7, 6272  ;;  %p1612_p10 = scmp.lt.s32.totalorder %s173_s7, %s173_s7 }
  0x21   : > { %p1605_p9 = scmp.ne.s32.totalorder %s173_s7, %s1604_s16  ;;  %p1613_p8 = scmp.lt.s32.totalorder %s1604_s16, %s1604_s16 }
  0x23   : > { %p1607_p12 = pnand %p1605_p9, %p1593_p1  ;;  %p1614_p11 = por %p1613_p8, %p1612_p10 }
  0x25   : > { %p1608_p5 = pneg %p1607_p12 }
  0x27   : > { %p1615_p4 = pnand %p1614_p11, %p1608_p5 }
  0x29   : > { %1618 = shalt.err (!%p1615_p4)
}
  0x2a   : > { %s1752_s17 = smov 64   ;;  %s1753_s18 = smov 4  }
  0x2b   : > { %1428 = dma.hbm_to_vmem [thread:$0]  (!%p1849_p13), %s2038_s1, 6272, %s173_s7, [#allocation5], %s1752_s17, %s1752_s17, %s1753_s18  }
  0x2c   : > { %p1223_p0 = scmp.ge.s32.totalorder %s1717_s21, 3 }
  0x2d   : > { %p2051_p2 = scmp.ne.s32.totalorder (!%p1223_p0), %s2046_s27, 0 }
  0x2e   : > { %191 = sbr.rel (%p1223_p0) target bundleno = 89 (0x59), region = 32 }
  0x35   : > { %194 = sbr.rel (!%p2051_p2) target bundleno = 89 (0x59), region = 36  ;;  %s195_s6 = sand.u32 (%p2051_p2), 1, %s1713_s20  }
  0x36   : > { %s1224_s9 = sshll.u32 (%p2051_p2), %s1717_s21, 1  ;;  %s1417_s10 = smul.u32 (%p2051_p2), 112, %s195_s6 }
  0x37   : > { %s201_s11 = ssub.s32 (%p2051_p2), 5, %s1224_s9  ;;  %s1877_s13 = scalar_lea.sflag (%p2051_p2), [#allocation3], %s195_s6 }
  0x38   : > { %p202_p4 = scmp.lt.s32.totalorder (%p2051_p2), %s201_s11, 2  ;;  %s199_s7 = scalar_lea.vmem (%p2051_p2), [#allocation2], %s1417_s10 }
  0x3c   : > { %s2062_s11 = smov (!%p202_p4, %s201_s11), 2 }
  0x3d   : > { %s1874_s12 = smul.u32 896, %s2062_s11 }
  0x3f   : > { %s207_s8 = ssub.s32 1792, %s1874_s12 }
  0x40   : > { %208 = vsyncadd %s1877_s13, %s207_s8  ;;  %p1227_p5 = scmp.ne.s32.totalorder %s1874_s12, 0  ;;  %s1418_s27 = smul.u32 1792, %s1717_s21 }
  0x41   : > { %s214_s14 = sshll.u32 %s199_s7, 4  ;;  %s1623_s21 = scalar_lea.hbm %s2037_s0, 4480  ;;  %s1887_s14 = int_to_ptr.vmem [resolvable:$true] %s214_s14 }
  0x42   : > { %s1885_s17 = scalar_lea.hbm %s2037_s0, %s1418_s27 }
  0x43   : > { %s1619_s18 = scalar_lea.hbm %s1885_s17, %s1874_s12  ;;  %p1624_p13 = scmp.lt.u32.totalorder %s1885_s17, %s2037_s0 }
  0x44   : > { %p1620_p8 = scmp.ne.s32.totalorder %s1885_s17, %s1619_s18  ;;  %p1625_p1 = scmp.lt.u32.totalorder %s1623_s21, %s1619_s18 }
  0x45   : > { %p1627_p6 = scmp.lt.u32.totalorder %s1619_s18, %s1885_s17 }
  0x46   : > { %p1621_p10 = pnand %p1620_p8, %p1227_p5  ;;  %p1626_p3 = por %p1625_p1, %p1624_p13 }
  0x48   : > { %p1622_p11 = pneg %p1621_p10  ;;  %p1628_p7 = por %p1627_p6, %p1626_p3 }
  0x4a   : > { %p1629_p9 = pnand %p1628_p7, %p1622_p11 }
  0x4c   : > { %1632 = shalt.err (!%p1629_p9)
}
  0x4d   : > { %s1633_s10 = scalar_lea.vmem %s1887_s14, %s1874_s12  ;;  %s1754_s11 = smov [#allocation2]  }
  0x4e   : > { %p1634_p12 = scmp.ne.s32.totalorder %s1887_s14, %s1633_s10  ;;  %s1637_s8 = sshll.u32 %s1754_s11, 4  ;;  %s1638_s8 = int_to_ptr.vmem [resolvable:$false] %s1637_s8 }
  0x4f   : > { %s1639_s7 = scalar_lea.vmem %s1638_s8, 3584  ;;  %p1640_p4 = scmp.lt.s32.totalorder %s1887_s14, %s1638_s8 }
  0x50   : > { %p1635_p0 = pnand %p1634_p12, %p1227_p5  ;;  %p1641_p8 = scmp.lt.s32.totalorder %s1639_s7, %s1633_s10 }
  0x52   : > { %p1636_p2 = pneg %p1635_p0  ;;  %p1642_p10 = por %p1641_p8, %p1640_p4 }
  0x54   : > { %p1643_p13 = pnand %p1642_p10, %p1636_p2 }
  0x56   : > { %1646 = shalt.err (!%p1643_p13)
}
  0x57   : > { %s1755_s27 = smov 896   ;;  %s1756_s15 = smov 56  }
  0x58   : > { %220 = dma.hbm_to_vmem [thread:$0]  (%p1227_p5), %s1885_s17, %s1874_s12, %s1887_s14, %s1877_s13, %s1755_s27, %s1755_s27, %s1756_s15  }
  0x59 PF: > { %p2052_p11 = scmp.ne.s32.totalorder %s2049_s30, 0 }
  0x5a   : > { %s1917_s16 = sand.u32 (!%p2052_p11), 1, %s1709_s19   ;;  %p2053_p1 = scmp.ne.s32.totalorder (!%p2052_p11), %s2047_s28, 0 }
  0x5b   : > { %226 = sbr.rel (%p2052_p11) target bundleno = 658 (0x292), region = 40  ;;  %s229_s24 = scalar_lea.sflag (!%p2052_p11), [#allocation3], %s1917_s16 }
  0x5c   : > { %s1419_s18 = smul.u32 (!%p2052_p11), 112, %s1917_s16 }
  0x5e   : > { %s1921_s25 = scalar_lea.vmem (!%p2052_p11), [#allocation2], %s1419_s18 }
  0x62   : > { %1696 = dma.done.wait (%p2053_p1), %s229_s24, 1792  }
  0x63   : > { %1698 = vsyncadd (%p2053_p1), %s229_s24, 4294965504  ;;  %p2054_p5 = scmp.eq.s32.totalorder %s1808_s22, 0 }
  0x65   : > { %1700 = dma.done.wait (%p2054_p5), [#allocation5], 6272   ;;  %p2055_p3 = pmov %p2054_p5 }
  0x66   : > { %v1534_v0 = vld [vmem:[#allocation4 + $0x40] sm:$0xff]   ;;  %v1538_v4 = vld [vmem:[#allocation4 + $0x48] sm:$0xff]   ;;  %v1542_v8 = vld [vmem:[#allocation4 + $0x50] sm:$0xff]   ;;  %v1757_v43 = vmov 0.0   ;;  %vm1758_vm0 = vmmov 0   ;;  %vm694_vm1 = vcmask 130048  }
  0x67   : > { %1702 = vsyncadd (%p2055_p3), [#allocation5], 4294961024  ;;  %v1535_v1 = vld [vmem:[#allocation4] sm:$0xff]   ;;  %1314 = vmatprep.subr.bf16.mxu0 %v1534_v0  ;;  %v1539_v5 = vld [vmem:[#allocation4 + $0x8] sm:$0xff]   ;;  %s1233_s28 = sshll.u32 %s1917_s16, 4  ;;  %vm977_vm2 = vcmask 80896  }
  0x68   : > { %v1536_v2 = vld [vmem:[#allocation4 + $0xc0] sm:$0xff]   ;;  %1315 = vmatpush3.bf16.msra.mxu0 %v1535_v1  ;;  %v1540_v6 = vld [vmem:[#allocation4 + $0xc8] sm:$0xff]   ;;  %v1543_v9 = vld [vmem:[#allocation4 + $0x10] sm:$0xff]   ;;  %s1989_s13 = scalar_lea.vmem [#allocation6], %s1233_s28   ;;  %p2056_p6 = scmp.ne.s32.totalorder %s2048_s29, 0 }
  0x69   : > { %v1537_v3 = vld [vmem:[#allocation4 + $0x80] sm:$0xff]   ;;  %1336 = vmatprep.subr.bf16.mxu1 %v1536_v2  ;;  %1316 = vmatprep.subr.bf16.mxu0 %v1538_v4  ;;  %v1541_v7 = vld [vmem:[#allocation4 + $0x88] sm:$0xff]   ;;  %v1544_v10 = vld [vmem:[#allocation4 + $0xd0] sm:$0xff]   ;;  %s1295_s16 = sshll.u32 (%p2056_p6), %s1808_s22, 1  ;;  %s1311_s14 = sshll.u32 (%p2056_p6), %s1808_s22, 4 }
  0x6a   : > { %1337 = vmatpush3.bf16.msra.mxu1 %v1537_v3  ;;  %v1545_v11 = vld [vmem:[#allocation4 + $0x90] sm:$0xff]   ;;  %v1546_v12 = vld [vmem:[#allocation4 + $0x58] sm:$0xff]   ;;  %v1550_v16 = vld [vmem:[#allocation4 + $0x60] sm:$0xff]   ;;  %s988_s17 = ssub.s32 (%p2056_p6), 5, %s1295_s16  ;;  %s2000_s9 = scalar_lea.vmem (%p2056_p6), %s2042_s5, %s1311_s14  }
  0x6b   : > { %1338 = vmatprep.subr.bf16.mxu1 %v1540_v6  ;;  %v1547_v13 = vld [vmem:[#allocation4 + $0x18] sm:$0xff]   ;;  %v1551_v17 = vld [vmem:[#allocation4 + $0x20] sm:$0xff]   ;;  %v1554_v20 = vld [vmem:[#allocation4 + $0x68] sm:$0xff]   ;;  %p989_p7 = scmp.lt.s32.totalorder (%p2056_p6), %s988_s17, 2 }
  0x6c   : > { %1317 = vmatpush3.bf16.msra.mxu0 %v1539_v5  ;;  %v1548_v14 = vld [vmem:[#allocation4 + $0xd8] sm:$0xff]   ;;  %v1552_v18 = vld [vmem:[#allocation4 + $0xe0] sm:$0xff]   ;;  %v1555_v21 = vld [vmem:[#allocation4 + $0x28] sm:$0xff]  }
  0x6d   : > { %1318 = vmatprep.subr.bf16.mxu0 %v1542_v8  ;;  %v1549_v15 = vld [vmem:[#allocation4 + $0x98] sm:$0xff]   ;;  %v1553_v19 = vld [vmem:[#allocation4 + $0xa0] sm:$0xff]   ;;  %v1556_v22 = vld [vmem:[#allocation4 + $0xe8] sm:$0xff]  }
  0x6e   : > { %1339 = vmatpush3.bf16.msra.mxu1 %v1541_v7  ;;  %v1557_v23 = vld [vmem:[#allocation4 + $0xa8] sm:$0xff]   ;;  %v1558_v24 = vld [vmem:[#allocation4 + $0x70] sm:$0xff]   ;;  %v1562_v28 = vld [vmem:[#allocation4 + $0x78] sm:$0xff]  }
  0x6f   : > { %1340 = vmatprep.subr.bf16.mxu1 %v1544_v10  ;;  %v1559_v25 = vld [vmem:[#allocation4 + $0x30] sm:$0xff]   ;;  %v1563_v29 = vld [vmem:[#allocation4 + $0x38] sm:$0xff]   ;;  %v1566_v38 = vld [vmem:[#allocation4 + $0x140] sm:$0xff]  }
  0x70   : > { %1319 = vmatpush3.bf16.msra.mxu0 %v1543_v9  ;;  %v1560_v26 = vld [vmem:[#allocation4 + $0xf0] sm:$0xff]   ;;  %v1564_v30 = vld [vmem:[#allocation4 + $0xf8] sm:$0xff]   ;;  %v1567_v42 = vld [vmem:[#allocation4 + $0x100] sm:$0xff]  }
  0x71   : > { %1320 = vmatprep.subr.bf16.mxu0 %v1546_v12  ;;  %v1561_v27 = vld [vmem:[#allocation4 + $0xb0] sm:$0xff]   ;;  %v275_v31 = vld [vmem:[%s1921_s25 + $0x8] sm:$0xff]  ;;  %v281_v36 = vld [vmem:[%s1921_s25 + $0x38] sm:$0xff] }
  0x72   : > { %1341 = vmatpush3.bf16.msra.mxu1 %v1545_v11  ;;  %v282_v32 = vld [vmem:[%s1921_s25 + $0x40] sm:$0xff]  ;;  %v1565_v34 = vld [vmem:[#allocation4 + $0xb8] sm:$0xff]   ;;  %v284_v40 = vld [vmem:[%s1921_s25 + $0x50] sm:$0xff] }
  0x73   : > { %1342 = vmatprep.subr.bf16.mxu1 %v1548_v14  ;;  %v289_v33 = vpack.c.bf16 %v282_v32, %v275_v31  ;;  %v274_v35 = vld [vmem:[%s1921_s25] sm:$0xff]  ;;  %v277_v39 = vld [vmem:[%s1921_s25 + $0x18] sm:$0xff]  ;;  %v276_v44 = vld [vmem:[%s1921_s25 + $0x10] sm:$0xff] }
  0x74   : > { %1321 = vmatpush3.bf16.msra.mxu0 %v1547_v13  ;;  %v288_v37 = vpack.c.bf16 %v281_v36, %v274_v35  ;;  %v291_v41 = vpack.c.bf16 %v284_v40, %v277_v39  ;;  %v283_v45 = vld [vmem:[%s1921_s25 + $0x48] sm:$0xff]  ;;  %v1570_v49 = vld [vmem:[#allocation4 + $0x150] sm:$0xff]   ;;  %v1574_v53 = vld [vmem:[#allocation4 + $0x160] sm:$0xff]  }
  0x75   : > { %1322 = vmatprep.subr.bf16.mxu0 %v1550_v16  ;;  %730 = vmatprep.mubr.bf16.mxu0 %v289_v33  ;;  %v290_v46 = vpack.c.bf16 %v283_v45, %v276_v44  ;;  %v1568_v47 = vld [vmem:[#allocation4 + $0x148] sm:$0xff]   ;;  %v1571_v50 = vld [vmem:[#allocation4 + $0x110] sm:$0xff]   ;;  %v1572_v51 = vld [vmem:[#allocation4 + $0x158] sm:$0xff]  }
  0x76   : > { %1343 = vmatpush3.bf16.msra.mxu1 %v1549_v15  ;;  %771 = vmatprep.mubr.bf16.mxu1 %v291_v41  ;;  %v1569_v48 = vld [vmem:[#allocation4 + $0x108] sm:$0xff]   ;;  %v1573_v52 = vld [vmem:[#allocation4 + $0x118] sm:$0xff]   ;;  %v1575_v54 = vld [vmem:[#allocation4 + $0x120] sm:$0xff]  }
  0x77   : > { %1344 = vmatprep.subr.bf16.mxu1 %v1552_v18  ;;  %v1576_v55 = vld [vmem:[#allocation4 + $0x168] sm:$0xff]   ;;  %v1582_v56 = vld [vmem:[#allocation4 + $0x180] sm:$0xff]   ;;  %v1578_v59 = vld [vmem:[#allocation4 + $0x170] sm:$0xff]  }
  0x78   : > { %1323 = vmatpush3.bf16.msra.mxu0 %v1551_v17  ;;  %v279_v57 = vld [vmem:[%s1921_s25 + $0x28] sm:$0xff]  ;;  %v286_v60 = vld [vmem:[%s1921_s25 + $0x60] sm:$0xff]  ;;  %v280_v62 = vld [vmem:[%s1921_s25 + $0x30] sm:$0xff] }
  0x79   : > { %1324 = vmatprep.subr.bf16.mxu0 %v1554_v20  ;;  %v1577_v58 = vld [vmem:[#allocation4 + $0x128] sm:$0xff]   ;;  %v293_v61 = vpack.c.bf16 %v286_v60, %v279_v57  ;;  %v1579_v1 = vld [vmem:[#allocation4 + $0x130] sm:$0xff]   ;;  %v1580_v2 = vld [vmem:[#allocation4 + $0x178] sm:$0xff]  }
  0x7a   : > { %1345 = vmatpush3.bf16.msra.mxu1 %v1553_v19  ;;  %v287_v63 = vld [vmem:[%s1921_s25 + $0x68] sm:$0xff]  ;;  %v278_v4 = vld [vmem:[%s1921_s25 + $0x20] sm:$0xff]  ;;  %v285_v5 = vld [vmem:[%s1921_s25 + $0x58] sm:$0xff] }
  0x7b   : > { %1346 = vmatprep.subr.bf16.mxu1 %v1556_v22  ;;  %v294_v0 = vpack.c.bf16 %v287_v63, %v280_v62  ;;  %v1581_v3 = vld [vmem:[#allocation4 + $0x138] sm:$0xff]   ;;  %v292_v6 = vpack.c.bf16 %v285_v5, %v278_v4  ;;  %v1583_v7 = vld [vmem:[%s2040_s3] sm:$0xff]   ;;  %v1584_v8 = vld [vmem:[%s2040_s3 + $0x8] sm:$0xff]  }
  0x7c   : > { %1325 = vmatpush3.bf16.msra.mxu0 %v1555_v21  ;;  %v1585_v9 = vld [vmem:[%s2040_s3 + $0x10] sm:$0xff]   ;;  %v1586_v10 = vld [vmem:[%s2040_s3 + $0x18] sm:$0xff]   ;;  %v1587_v11 = vld [vmem:[%s2040_s3 + $0x20] sm:$0xff]  }
  0x7d   : > { %1326 = vmatprep.subr.bf16.mxu0 %v1558_v24  ;;  %v1588_v12 = vld [vmem:[%s2040_s3 + $0x28] sm:$0xff]   ;;  %v1589_v13 = vld [vmem:[%s2040_s3 + $0x30] sm:$0xff]   ;;  %v1590_v14 = vld [vmem:[%s2040_s3 + $0x38] sm:$0xff]  }
  0x7e   : > { %1347 = vmatpush3.bf16.msra.mxu1 %v1557_v23  ;;  %v1234_v16 = vld [vmem:[%s2039_s2] ss:$0 sm:$0xff] }
  0x7f   : > { %1348 = vmatprep.subr.bf16.mxu1 %v1560_v26 }
  0x80   : > { %1327 = vmatpush3.bf16.msra.mxu0 %v1559_v25 }
  0x81   : > { %1328 = vmatprep.subr.bf16.mxu0 %v1562_v28 }
  0x82   : > { %1349 = vmatpush3.bf16.msra.mxu1 %v1561_v27 }
  0x83   : > { %1350 = vmatprep.subr.bf16.mxu1 %v1564_v30 }
  0x84   : > { %1329 = vmatpush3.bf16.msra.mxu0 %v1563_v29 }
  0x85   : > { %1358 = vmatprep.subr.bf16.mxu0 %v1566_v38 }
  0x86   : > { %1351 = vmatpush3.bf16.msra.mxu1 %v1565_v34 }
  0x87   : > { %1391 = vmatprep.subr.bf16.mxu1 %v1757_v43  ;;  %731 = vmatmul.mubr.bf16.vlgmr.msra.gmra.mrb[0].mxu0 %v288_v37 }
  0x88   : > { %1359 = vmatpush3.bf16.msra.mxu0 %v1567_v42  ;;  %812 = vmatprep.mubr.bf16.mxu0 %v293_v61 }
  0x89   : > { %772 = vmatmul.mubr.bf16.vlgmr.msra.gmra.mrb[0].mxu1 %v290_v46  ;;  %1360 = vmatprep.subr.bf16.mxu0 %v1568_v47 }
  0x8a   : > { %1393 = vmatprep.mubr.msk.bf16.mxu1 %vm1758_vm0, %v1757_v43  ;;  %1392 = vmatpush3.bf16.msra.mxu1 %v1582_v56 }
  0x8b   : > { %1397 = vmatprep.subr.bf16.mxu1 %v1757_v43 }
  0x8c   : > { %1361 = vmatpush3.bf16.msra.mxu0 %v1569_v48 }
  0x8d   : > { %1362 = vmatprep.subr.bf16.mxu0 %v1570_v49  ;;  %v1285_v49 = vld [vmem:[%s2041_s4] ss:$0 sm:$0xff] }
  0x90   : > { %1363 = vmatpush3.bf16.msra.mxu0 %v1571_v50 }
  0x91   : > { %1364 = vmatprep.subr.bf16.mxu0 %v1572_v51  ;;  %1394 = vmatmul.mubr.msk.bf16.vlgmr.msra.gmra.mrb[4].mxu1 %vm694_vm1, %v294_v0 }
  0x92   : > { %1413 = vmatprep.mubr.msk.bf16.mxu1 %vm1758_vm0, %v1757_v43  ;;  %1398 = vmatpush3.bf16.msra.mxu1 %v1583_v7 }
  0x93   : > { %1399 = vmatprep.subr.bf16.mxu1 %v1757_v43 }
  0x94   : > { %1365 = vmatpush3.bf16.msra.mxu0 %v1573_v52 }
  0x95   : > { %1366 = vmatprep.subr.bf16.mxu0 %v1574_v53 }
  0x96   : > { %1400 = vmatpush3.bf16.msra.mxu1 %v1584_v8 }
  0x97   : > { %1401 = vmatprep.subr.bf16.mxu1 %v1757_v43 }
  0x98   : > { %1367 = vmatpush3.bf16.msra.mxu0 %v1575_v54 }
  0x99   : > { %1368 = vmatprep.subr.bf16.mxu0 %v1576_v55 }
  0x9a   : > { %1402 = vmatpush3.bf16.msra.mxu1 %v1585_v9 }
  0x9b   : > { %1403 = vmatprep.subr.bf16.mxu1 %v1757_v43 }
  0x9c   : > { %1369 = vmatpush3.bf16.msra.mxu0 %v1577_v58 }
  0x9d   : > { %1370 = vmatprep.subr.bf16.mxu0 %v1578_v59 }
  0x9e   : > { %1404 = vmatpush3.bf16.msra.mxu1 %v1586_v10 }
  0x9f   : > { %1405 = vmatprep.subr.bf16.mxu1 %v1757_v43 }
  0xa0   : > { %1371 = vmatpush3.bf16.msra.mxu0 %v1579_v1 }
  0xa1   : > { %1372 = vmatprep.subr.bf16.mxu0 %v1580_v2 }
  0xa2   : > { %1406 = vmatpush3.bf16.msra.mxu1 %v1587_v11 }
  0xa3   : > { %1407 = vmatprep.subr.bf16.mxu1 %v1757_v43 }
  0xa4   : > { %1373 = vmatpush3.bf16.msra.mxu0 %v1581_v3 }
  0xa6   : > { %1408 = vmatpush3.bf16.msra.mxu1 %v1588_v12 }
  0xa7   : > { %813 = vmatmul.mubr.bf16.vlgmr.msra.gmra.mrb[4].mxu0 %v292_v6  ;;  %1409 = vmatprep.subr.bf16.mxu1 %v1757_v43 }
  0xaa   : > { %1410 = vmatpush3.bf16.msra.mxu1 %v1589_v13 }
  0xab   : > { %1411 = vmatprep.subr.bf16.mxu1 %v1757_v43 }
  0xae   : > { %1412 = vmatpush3.bf16.msra.mxu1 %v1590_v14 }
 0x15a   : > { %v1330_v15 = vpop.f32.mrb[0].mxu0 }
 0x15b   : > { %v1331_v17 = vpop.f32.mrb[1].mxu0 }
 0x15c   : > { %v1332_v18 = vadd.f32 %v1331_v17, %v1330_v15  ;;  %v1333_v19 = vpop.f32.mrb[2].mxu0  ;;  %v1352_v20 = vpop.f32.mrb[0].mxu1 }
 0x15d   : > { %v1334_v21 = vpop.f32.mrb[3].mxu0  ;;  %v1353_v24 = vpop.f32.mrb[1].mxu1 }
 0x15e   : > { %v733_v22 = vadd.f32 %v1332_v18, %v1234_v16  ;;  %v1335_v23 = vadd.f32 %v1334_v21, %v1333_v19  ;;  %v1354_v25 = vadd.f32 %v1353_v24, %v1352_v20  ;;  %v1355_v26 = vpop.f32.mrb[2].mxu1 }
 0x15f   : > { %v1356_v28 = vpop.f32.mrb[3].mxu1 }
 0x160   : > { %v736_v27 = vadd.f32 %v1335_v23, %v1234_v16  ;;  %v774_v29 = vadd.f32 %v1354_v25, %v733_v22  ;;  %v1357_v30 = vadd.f32 %v1356_v28, %v1355_v26 }
 0x162   : > { %v777_v31 = vadd.f32 %v1357_v30, %v736_v27 }
 0x164   : > { %v855_v32 = vpop.f32.mrb[4].mxu1 }
 0x165   : > { %v1395_v33 = vpop.f32.mrb[5].mxu1 }
 0x166   : > { %v858_v34 = vpop.f32.mrb[6].mxu1 }
 0x167   : > { %v1396_v35 = vpop.f32.mrb[7].mxu1 }
 0x17a   : > { %v1374_v36 = vpop.f32.mrb[4].mxu0 }
 0x17b   : > { %v1375_v37 = vpop.f32.mrb[5].mxu0 }
 0x17c   : > { %v1376_v38 = vadd.f32 %v1375_v37, %v1374_v36  ;;  %v1377_v39 = vpop.f32.mrb[6].mxu0 }
 0x17d   : > { %v1378_v40 = vpop.f32.mrb[7].mxu0 }
 0x17e   : > { %v815_v41 = vadd.f32 %v1376_v38, %v774_v29  ;;  %v1379_v42 = vadd.f32 %v1378_v40, %v1377_v39 }
 0x180   : > { %v856_v43 = vadd.f32 %v855_v32, %v815_v41  ;;  %v818_v44 = vadd.f32 %v1379_v42, %v777_v31 }
 0x182   : > { %v859_v45 = vadd.f32 %v858_v34, %v818_v44  ;;  %v862_v46 = vmax.f32 %v856_v43, 0.0 }
 0x184   : > { %v863_v47 = vmax.f32 %v859_v45, 0.0 }
 0x186   : > { %v864_v48 = vpack.c.bf16 %v863_v47, %v862_v46 }
 0x188   : > { %1414 = vmatmul.mubr.bf16.vlgmr.msra.gmra.mrb[8].mxu1 %v864_v48 }
 0x25a   : > { %986 = sbr.rel (!%p2056_p6) target bundleno = 658 (0x292), region = 52 }
 0x25b   : > { %v970_v50 = vpop.f32.mrb[8].mxu1 }
 0x25c   : > { %v971_v51 = vadd.f32 %v1285_v49, %v970_v50  ;;  %v1415_v52 = vpop.f32.mrb[9].mxu1 }
 0x25d   : > { %v973_v53 = vpop.f32.mrb[10].mxu1 }
 0x25e   : > { %978 = vst.msk [vmem:[%s1989_s13] sm:$0xff] %vm977_vm2, %v971_v51  ;;  %v974_v54 = vadd.f32 %v1285_v49, %v973_v53  ;;  %v1416_v55 = vpop.f32.mrb[11].mxu1 }
 0x260   : > { %979 = vst.msk [vmem:[%s1989_s13 + $0x8] sm:$0xff] %vm977_vm2, %v974_v54 }
 0x261   : > { %s2064_s17 = smov (!%p989_p7, %s988_s17), 2 }
 0x262   : > { %s1296_s10 = sshll.u32 %s2064_s17, 7 }
 0x263   : > { %p1299_p9 = scmp.eq.s32.totalorder %s1296_s10, 0 }
 0x264   : > { %s2006_s29 = sshrl.u32 (!%p1299_p9), %s2064_s17, 1 }
 0x265   : > { %997 = sbr.rel (%p1299_p9) target bundleno = 658 (0x292), region = 56  ;;  %p1300_p12 = scmp.le.s32.totalorder (!%p1299_p9), %s2006_s29, 0 }
 0x26c   : > { %1164 = sbr.rel (%p1300_p12) target bundleno = 637 (0x27d), region = 138  ;;  %s1719_s22 = smov (!%p1300_p12), %s2000_s9  }
 0x26d   : > { %s1723_s11 = smov (!%p1300_p12), %s1989_s13   ;;  %s1727_s8 = smov (!%p1300_p12), 0  }
 0x26e   : > { %s1731_s7 = smov (!%p1300_p12), 0  }
 0x273 LB: >> { %v1061_v56 = vld [vmem:[%s1725_s11] sm:$0xff]  ;;  %v1063_v57 = vld [vmem:[%s1725_s11 + $0x8] sm:$0xff]  ;;  %s1065_s27 = sadd.s32 1, %s1729_s8  ;;  %s1055_s7 = sadd.s32 1, %s1733_s7   ;;  %s1733_s7 = sphi %s1731_s7, %s1055_s7   ;;  %s1729_s8 = sphi %s1727_s8, %s1728_s8   ;;  %s1725_s11 = sphi %s1723_s11, %s1070_s11   ;;  %s1721_s22 = sphi %s1719_s22, %s1071_s22  }
 0x274   : >> { %1062 = vst [vmem:[%s1721_s22] sm:$0xff] %v1061_v56  ;;  %1064 = vst [vmem:[%s1721_s22 + $0x8] sm:$0xff] %v1063_v57  ;;  %p1066_p0 = scmp.ge.s32.totalorder %s1065_s27, %s2006_s29  ;;  %p1054_p2 = scmp.ge.s32.totalorder %s1055_s7, %s2006_s29 }
 0x276   : >> { %s2066_s27 = smov (%p1066_p0, %s1065_s27), 0  ;;  %1057 = sbr.rel (!%p1054_p2) target bundleno = 627 (0x273), region = 144 }
 0x277   : >> { %s1301_s15 = sshll.u32 %s2066_s27, 4  ;;  %s1728_s8 = smov %s2066_s27  }
 0x278   : >> { %s1070_s11 = scalar_lea.vmem %s1989_s13, %s1301_s15 [#allocation6]   ;;  %s1071_s22 = scalar_lea.vmem %s2000_s9, %s1301_s15  }
 0x27d PF: > { %s2016_s18 = sand.u32 1, %s2064_s17   ;;  %s1312_s24 = sshll.u32 %s2006_s29, 4 }
 0x27e   : > { %s1076_s25 = scalar_lea.vmem %s1989_s13, %s1312_s24 [#allocation6]   ;;  %s1078_s28 = scalar_lea.vmem %s2000_s9, %s1312_s24  }
 0x27f   : > { %p1306_p4 = scmp.le.s32.totalorder %s2016_s18, 0 }
 0x280   : > { %s1735_s30 = smov (!%p1306_p4), %s1078_s28   ;;  %s1739_s12 = smov (!%p1306_p4), %s1076_s25  }
 0x281   : > { %1178 = sbr.rel (%p1306_p4) target bundleno = 658 (0x292), region = 149  ;;  %s1743_s16 = smov (!%p1306_p4), 0  }
 0x282   : > { %s1747_s14 = smov (!%p1306_p4), 0  }
 0x288 LB: >> { %v1088_v58 = vld [vmem:[%s1741_s12] sm:$0xff]  ;;  %s1090_s17 = sadd.s32 1, %s1745_s16  ;;  %s1082_s14 = sadd.s32 1, %s1749_s14   ;;  %s1749_s14 = sphi %s1747_s14, %s1082_s14   ;;  %s1745_s16 = sphi %s1743_s16, %s1744_s16   ;;  %s1741_s12 = sphi %s1739_s12, %s1095_s12   ;;  %s1737_s30 = sphi %s1735_s30, %s1096_s30  }
 0x289   : >> { %1089 = vst [vmem:[%s1737_s30] sm:$0xff] %v1088_v58  ;;  %p1091_p8 = scmp.ge.s32.totalorder %s1090_s17, %s2016_s18  ;;  %p1081_p10 = scmp.ge.s32.totalorder %s1082_s14, %s2016_s18 }
 0x28b   : >> { %s2068_s17 = smov (%p1091_p8, %s1090_s17), 0  ;;  %1084 = sbr.rel (!%p1081_p10) target bundleno = 648 (0x288), region = 155 }
 0x28c   : >> { %s1307_s13 = sshll.u32 %s2068_s17, 3  ;;  %s1744_s16 = smov %s2068_s17  }
 0x28d   : >> { %s1095_s12 = scalar_lea.vmem %s1076_s25, %s1307_s13 [#allocation6]   ;;  %s1096_s30 = scalar_lea.vmem %s1078_s28, %s1307_s13  }
 0x292 PF: > { %p16_p13 = scmp.ge.s32.totalorder %s1811_s23, 5   ;;  %s2057_s18 = smov %s1709_s19 }
 0x293   : > { %s2058_s19 = smov %s1713_s20  ;;  %s2059_s20 = smov %s1821_s26 }
 0x294   : > { %s2060_s21 = smov %s1811_s23  ;;  %18 = sbr.rel (!%p16_p13) target bundleno = 4 (0x4), region = 166 }
 0x29b   :  { %1112 = vsyncpa [#allocation3], 1 }
 0x29c   :  { %1114 = vsyncpa [#allocation3 + $0x1], 1 }
 0x29d   :  { %1115 = vsyncpa [#allocation5], 1 }

</bundles_post_ra>
